<compile_context>
chip_gen: v7x
topology: tpu7x:2x2x1
jax: 0.10.0
libtpu: 0.0.40
codegen_flags: <defaults>
</compile_context>

<pallas_src>
import functools

import jax
import jax.numpy as jnp
from jax.experimental import pallas as pl
from jax.experimental.pallas import tpu as pltpu


def _round_up(x, m):
    return ((x + m - 1) // m) * m


def _vmem_capacity_bytes():
    # Per-TensorCore VMEM.  Fall back to the smallest (v7x: 64 MiB) if the
    # query is unavailable so the budget stays safe on every chip.
    try:
        return int(pltpu.get_tpu_info().vmem_capacity_bytes)
    except Exception:
        return 64 << 20


def _tile_channel_sum(x, lane_start, true_l, mask_tail):
    """Channel sums of a (C, T) tile -> (C, 1) float32.

    If mask_tail, lanes whose absolute position (tile starts at lane_start)
    is >= true_l are excluded -- they may hold garbage from an out-of-bounds
    partial block.
    """
    _, t = x.shape
    if mask_tail:
        lane = lane_start + jax.lax.broadcasted_iota(jnp.int32, (1, t), 1)
        x = jnp.where(lane < true_l, x, jnp.zeros((), x.dtype))
    if x.dtype == jnp.float32:
        # Exact f32 lane reduction.
        return jnp.sum(x, axis=-1, keepdims=True)
    # Sub-f32 dtypes: widening MXU reduction (f32 accumulate); avoids a
    # full-tile f32 upcast on the VPU (v5e has no bf16 VALU).
    ones = jnp.ones((t, 1), dtype=x.dtype)
    return jnp.dot(x, ones, preferred_element_type=jnp.float32)


# ------------------------------ fused path --------------------------------

def _fms_fused_kernel(x_ref, w_ref, b_ref, o_ref, *, inv_len):
    # x_ref/o_ref: (1, C, L) native dtype; w_ref: (C, C) f32 (PyTorch [out, in]);
    # b_ref: (C, 1) f32.
    x = x_ref[0]                                                     # (C, L)
    m = _tile_channel_sum(x, 0, 0, False) * inv_len                  # (C, 1) f32
    y = jnp.dot(w_ref[...], m, preferred_element_type=jnp.float32) + b_ref[...]
    scale = jax.nn.sigmoid(y)                                        # (C, 1) f32
    # x*scale + scale with f32 scale; single cast at the end.
    o_ref[0] = (x * scale + scale).astype(o_ref.dtype)


# ---------------------------- streaming path -------------------------------

def _fms_reduce_scale_kernel(x_ref, w_ref, b_ref, scale_ref, acc_ref,
                             *, inv_len, true_l, tl, mask_tail):
    # x_ref: (1, C, TL); w_ref: (C, C) f32; b_ref: (C, 1) f32;
    # scale_ref: (1, C, 1) f32 output (resident across the L-tile axis);
    # acc_ref: (C, 1) f32 scratch accumulator.
    lt = pl.program_id(1)

    @pl.when(lt == 0)
    def _():
        acc_ref[...] = jnp.zeros_like(acc_ref)

    acc_ref[...] += _tile_channel_sum(x_ref[0], lt * tl, true_l, mask_tail)

    @pl.when(lt == pl.num_programs(1) - 1)
    def _():
        m = acc_ref[...] * inv_len                                   # (C, 1)
        y = jnp.dot(w_ref[...], m,
                    preferred_element_type=jnp.float32) + b_ref[...]
        scale_ref[0] = jax.nn.sigmoid(y)                             # (C, 1)


def _fms_apply_kernel(scale_ref, x_ref, o_ref):
    # scale_ref: (1, C, 1) f32; x_ref/o_ref: (1, C, TL) native dtype.
    x = x_ref[0]
    scale = scale_ref[0]                                             # (C, 1) f32
    o_ref[0] = (x * scale + scale).astype(o_ref.dtype)


# -------------------------------- wrapper ----------------------------------

def fms_forward(x, weight, bias, *, l_tile=None, force_two_pass=False):
    """x: (B, C, L); weight: (C, C) [out, in]; bias: (C,)."""
    B, C, L = x.shape
    w = weight.astype(jnp.float32)                     # y = W @ mean + b
    b_col = bias.reshape(C, 1).astype(jnp.float32)
    inv_len = 1.0 / float(L)
    itemsize = jnp.dtype(x.dtype).itemsize
    x_bytes = B * C * L * itemsize
    wb_bytes = C * C * 4 + C * 4

    vmem_cap = _vmem_capacity_bytes()
    # ~112 MiB usable on v5e/v6e (128 MiB VMEM), ~48 MiB on v7x (64 MiB).
    fused_budget = max(vmem_cap - (16 << 20), 16 << 20)
    vmem_limit = int(max(vmem_cap - (8 << 20), 24 << 20))

    # VMEM tiles pad C to the sublane multiple and L to 128 lanes.
    sub = max(8, 32 // itemsize)
    cp, lp = _round_up(C, sub), _round_up(L, 128)
    # 2x double-buffered x + 2x double-buffered out slabs (native dtype),
    # plus ~3 full-slab f32 temporaries for the f32-precision epilogue,
    # plus weights and headroom.
    fused_bytes = cp * lp * (4 * itemsize + 12) + 4 * cp * cp + (2 << 20)
    use_fused = (not force_two_pass) and fused_bytes <= fused_budget

    if use_fused:
        # NOTE: grid=(B,); with B == 1 only one TensorCore is used on v7x --
        # the streaming path (many parallel steps) can win for that case.
        return pl.pallas_call(
            functools.partial(_fms_fused_kernel, inv_len=inv_len),
            out_shape=jax.ShapeDtypeStruct((B, C, L), x.dtype),
            grid_spec=pltpu.PrefetchScalarGridSpec(
                num_scalar_prefetch=0,
                grid=(B,),
                in_specs=[
                    pl.BlockSpec((1, C, L), lambda b: (b, 0, 0)),    # x slab
                    pl.BlockSpec((C, C), lambda b: (0, 0)),          # W (invariant)
                    pl.BlockSpec((C, 1), lambda b: (0, 0)),          # bias (invariant)
                ],
                out_specs=pl.BlockSpec((1, C, L), lambda b: (b, 0, 0)),
            ),
            compiler_params=pltpu.CompilerParams(
                dimension_semantics=("parallel",),
                vmem_limit_bytes=vmem_limit),
            cost_estimate=pl.CostEstimate(
                flops=int(4 * B * C * L + 2 * B * C * C),
                transcendentals=int(B * C),
                bytes_accessed=int(2 * x_bytes + wb_bytes)),
        )(x, w, b_col)

    # ------------------------ streaming two-pass -------------------------
    if l_tile is not None:
        tl = max(128, _round_up(min(int(l_tile), L), 128))
    else:
        # ~2 MiB x-blocks: big enough to hide per-grid-step overhead on all
        # chips, small enough to fit VMEM with double-buffering everywhere.
        tl = ((2 << 20) // (cp * itemsize)) // 128 * 128
        tl = max(128, tl)
    if tl >= L:
        tl = L            # single full-extent block (legal for any L)
    n_lt = (L + tl - 1) // tl
    mask_tail = (L % tl) != 0

    # Pass 1: per-batch channel sums over L with the C->C linear + sigmoid
    # fused into the last grid step (no extra launch, no HBM round-trip).
    scale = pl.pallas_call(
        functools.partial(_fms_reduce_scale_kernel, inv_len=inv_len,
                          true_l=L, tl=tl, mask_tail=mask_tail),
        out_shape=jax.ShapeDtypeStruct((B, C, 1), jnp.float32),
        grid_spec=pltpu.PrefetchScalarGridSpec(
            num_scalar_prefetch=0,
            grid=(B, n_lt),
            in_specs=[
                pl.BlockSpec((1, C, tl), lambda b, lt: (b, 0, lt)),  # x tile
                pl.BlockSpec((C, C), lambda b, lt: (0, 0)),          # W
                pl.BlockSpec((C, 1), lambda b, lt: (0, 0)),          # bias
            ],
            out_specs=pl.BlockSpec((1, C, 1), lambda b, lt: (b, 0, 0)),
            scratch_shapes=[pltpu.VMEM((C, 1), jnp.float32)],
        ),
        compiler_params=pltpu.CompilerParams(
            dimension_semantics=("parallel", "arbitrary"),
            vmem_limit_bytes=vmem_limit),
        cost_estimate=pl.CostEstimate(
            flops=int(2 * B * C * L + 2 * B * C * C),
            transcendentals=int(B * C),
            bytes_accessed=int(x_bytes + wb_bytes + B * C * 4)),
    )(x, w, b_col)

    # Pass 2: pure streaming elementwise apply (lane-dense tiles, no pad;
    # out-of-bounds lanes of the partial tail block are dropped at store).
    return pl.pallas_call(
        _fms_apply_kernel,
        out_shape=jax.ShapeDtypeStruct((B, C, L), x.dtype),
        grid_spec=pltpu.PrefetchScalarGridSpec(
            num_scalar_prefetch=0,
            grid=(B, n_lt),
            in_specs=[
                pl.BlockSpec((1, C, 1), lambda b, lt: (b, 0, 0)),    # scale
                pl.BlockSpec((1, C, tl), lambda b, lt: (b, 0, lt)),  # x tile
            ],
            out_specs=pl.BlockSpec((1, C, tl), lambda b, lt: (b, 0, lt)),
        ),
        compiler_params=pltpu.CompilerParams(
            dimension_semantics=("parallel", "parallel"),
            vmem_limit_bytes=vmem_limit),
        cost_estimate=pl.CostEstimate(
            flops=int(2 * B * C * L),
            transcendentals=0,
            bytes_accessed=int(2 * x_bytes + B * C * 4)),
    )(scale, x)


def fms_reference(x, weight, bias):
    m = jnp.mean(x.astype(jnp.float32), axis=-1)                     # (B, C)
    scale = jax.nn.sigmoid(m @ weight.T + bias)[:, :, None]          # (B, C, 1)
    return x.astype(jnp.float32) * scale + scale


if __name__ == "__main__":
    key = jax.random.PRNGKey(0)
    kx, kw, kb, kx2, kw2, kb2 = jax.random.split(key, 6)

    # Case 1: small shape -> fused single-read path (L not 128-aligned).
    B, C, L = 2, 4, 16
    x = jax.random.normal(kx, (B, C, L), dtype=jnp.float32)
    bound = 1.0 / (C ** 0.5)
    weight = jax.random.uniform(kw, (C, C), minval=-bound, maxval=bound,
                                dtype=jnp.float32)
    bias = jax.random.uniform(kb, (C,), minval=-bound, maxval=bound,
                              dtype=jnp.float32)

    out = jax.block_until_ready(fms_forward(x, weight, bias))
    ref = fms_reference(x, weight, bias)
    assert out.shape == (B, C, L)
    assert jnp.allclose(out, ref, atol=1e-5, rtol=1e-5), "fused path mismatch"

    # Case 2: force the streaming path on the same data (single full block).
    out2 = jax.block_until_ready(
        fms_forward(x, weight, bias, l_tile=128, force_two_pass=True))
    assert jnp.allclose(out2, ref, atol=1e-5, rtol=1e-5), "streaming mismatch"

    # Case 3: streaming path with several L tiles and a masked tail (L=300).
    B2, C2, L2 = 2, 8, 300
    x2 = jax.random.normal(kx2, (B2, C2, L2), dtype=jnp.float32)
    bound2 = 1.0 / (C2 ** 0.5)
    w2 = jax.random.uniform(kw2, (C2, C2), minval=-bound2, maxval=bound2,
                            dtype=jnp.float32)
    b2 = jax.random.uniform(kb2, (C2,), minval=-bound2, maxval=bound2,
                            dtype=jnp.float32)
    ref2 = fms_reference(x2, w2, b2)
    out3 = jax.block_until_ready(
        fms_forward(x2, w2, b2, l_tile=128, force_two_pass=True))
    assert out3.shape == (B2, C2, L2)
    assert jnp.allclose(out3, ref2, atol=1e-5, rtol=1e-5), "masked-tail mismatch"

    # Case 3b: same data through the fused path (unaligned-L full-dim block).
    out4 = jax.block_until_ready(fms_forward(x2, w2, b2))
    assert jnp.allclose(out4, ref2, atol=1e-5, rtol=1e-5), "fused unaligned-L mismatch"

    # Case 4: bf16 input exercises the widening MXU reduction path.
    xb = x2.astype(jnp.bfloat16)
    outb = jax.block_until_ready(fms_forward(xb, w2, b2))
    refb = fms_reference(xb, w2, b2)
    assert outb.dtype == jnp.bfloat16
    assert jnp.allclose(outb.astype(jnp.float32), refb,
                        atol=3e-2, rtol=3e-2), "bf16 mismatch"

    print("KERNEL_OK")
</pallas_src>

<mosaic_0001>
module attributes {stable_mosaic.version = 11 : i64} {
  func.func @_fms_fused_kernel(%arg0: i32, %arg1: memref<1x4x16xf32, #tpu.memory_space<vmem>>, %arg2: memref<4x4xf32, #tpu.memory_space<vmem>>, %arg3: memref<4x1xf32, #tpu.memory_space<vmem>>, %arg4: memref<1x4x16xf32, #tpu.memory_space<vmem>>) attributes {dimension_semantics = [#tpu.dimension_semantics<parallel>], iteration_bounds = array<i64: 2>, scalar_prefetch = 0 : i64, scratch_operands = 0 : i64, tpu.core_type = #tpu.core_type<tc>, window_params = [{transform_indices = @transform_0, window_bounds = array<i64: 1, 4, 16>}, {pipeline_mode = #tpu.pipeline_mode<synchronous>, transform_indices = @transform_1, window_bounds = array<i64: 4, 4>}, {pipeline_mode = #tpu.pipeline_mode<synchronous>, transform_indices = @transform_2, window_bounds = array<i64: 4, 1>}, {transform_indices = @transform_3, window_bounds = array<i64: 1, 4, 16>}]} {
    %c0 = arith.constant 0 : index
    %c0_0 = arith.constant 0 : index
    %c0_1 = arith.constant 0 : index
    %0 = vector.load %arg1[%c0, %c0_0, %c0_1] : memref<1x4x16xf32, #tpu.memory_space<vmem>>, vector<1x4x16xf32>
    %1 = vector.shape_cast %0 : vector<1x4x16xf32> to vector<4x16xf32>
    %cst = arith.constant dense<0.000000e+00> : vector<4xf32>
    %2 = vector.multi_reduction <add>, %1, %cst [1] : vector<4x16xf32> to vector<4xf32>
    %3 = vector.shape_cast %2 : vector<4xf32> to vector<4x1xf32>
    %cst_2 = arith.constant 6.250000e-02 : f32
    %4 = vector.broadcast %cst_2 : f32 to vector<4x1xf32>
    %5 = arith.mulf %3, %4 : vector<4x1xf32>
    %c0_3 = arith.constant 0 : index
    %c0_4 = arith.constant 0 : index
    %6 = vector.load %arg2[%c0_3, %c0_4] : memref<4x4xf32, #tpu.memory_space<vmem>>, vector<4x4xf32>
    %cst_5 = arith.constant dense<0.000000e+00> : vector<4x1xf32>
    %7 = tpu.matmul %6, %5, %cst_5 {dimension_numbers = #tpu.dot_dimension_numbers<[1], [0], [0], [1], [0, 0, 1, 1], [], []>} : vector<4x4xf32>, vector<4x1xf32>, vector<4x1xf32> -> vector<4x1xf32>
    %c0_6 = arith.constant 0 : index
    %c0_7 = arith.constant 0 : index
    %8 = vector.load %arg3[%c0_6, %c0_7] : memref<4x1xf32, #tpu.memory_space<vmem>>, vector<4x1xf32>
    %9 = arith.addf %7, %8 : vector<4x1xf32>
    %10 = arith.negf %9 : vector<4x1xf32>
    %11 = math.exp %10 : vector<4x1xf32>
    %cst_8 = arith.constant 1.000000e+00 : f32
    %12 = vector.broadcast %cst_8 : f32 to vector<4x1xf32>
    %13 = arith.addf %12, %11 : vector<4x1xf32>
    %14 = arith.divf %12, %13 : vector<4x1xf32>
    %15 = vector.broadcast %14 : vector<4x1xf32> to vector<4x16xf32>
    %16 = arith.mulf %1, %15 : vector<4x16xf32>
    %17 = vector.broadcast %14 : vector<4x1xf32> to vector<4x16xf32>
    %18 = arith.addf %16, %17 : vector<4x16xf32>
    %c0_9 = arith.constant 0 : index
    %c0_10 = arith.constant 0 : index
    %c0_11 = arith.constant 0 : index
    %19 = vector.load %arg4[%c0_9, %c0_10, %c0_11] : memref<1x4x16xf32, #tpu.memory_space<vmem>>, vector<1x4x16xf32>
    %20 = vector.shape_cast %19 : vector<1x4x16xf32> to vector<4x16xf32>
    %21 = vector.shape_cast %18 : vector<4x16xf32> to vector<1x4x16xf32>
    tpu.vector_store %arg4[%c0_9, %c0_10, %c0_11], %21 {strides = array<i32>} : memref<1x4x16xf32, #tpu.memory_space<vmem>>, vector<1x4x16xf32>,
    return
  }
  func.func @transform_0(%arg0: i32) -> (i32, i32, i32) {
    %c0_i32 = arith.constant 0 : i32
    %c0_i32_0 = arith.constant 0 : i32
    %c0_i32_1 = arith.constant 0 : i32
    return %arg0, %c0_i32, %c0_i32_0 : i32, i32, i32
  }
  func.func @transform_1(%arg0: i32) -> (i32, i32) {
    %c0_i32 = arith.constant 0 : i32
    %c0_i32_0 = arith.constant 0 : i32
    %c0_i32_1 = arith.constant 0 : i32
    return %c0_i32, %c0_i32_0 : i32, i32
  }
  func.func @transform_2(%arg0: i32) -> (i32, i32) {
    %c0_i32 = arith.constant 0 : i32
    %c0_i32_0 = arith.constant 0 : i32
    %c0_i32_1 = arith.constant 0 : i32
    return %c0_i32, %c0_i32_0 : i32, i32
  }
  func.func @transform_3(%arg0: i32) -> (i32, i32, i32) {
    %c0_i32 = arith.constant 0 : i32
    %c0_i32_0 = arith.constant 0 : i32
    %c0_i32_1 = arith.constant 0 : i32
    return %arg0, %c0_i32, %c0_i32_0 : i32, i32, i32
  }
}

</mosaic_0001>

<bundles_post_ra>
// kernel: tpu_custom_call.1
= control target key start
LH: loop header
LB: loop body
LE: loop exit
PB: predicated region body
PF: predicated region fallthrough
CT: control target
= control target key end

     0   :  { %8 = vsyncpa [#allocation3], 0  ;;  %s742_s0 = inlined_call_operand.hbm [shape: f32[2,4,16], index: 0, kind: input, shape index: {}]   ;;  %s743_s1 = inlined_call_operand.vmem [shape: f32[4,4], index: 1, kind: input, shape index: {}]   ;;  %s744_s2 = inlined_call_operand.vmem [shape: f32[4,1], index: 2, kind: input, shape index: {}]   ;;  %s745_s3 = inlined_call_operand.hbm [shape: f32[2,4,16], index: 3, kind: output, shape index: {}]  }
   0x1   :  { %10 = vsyncpa [#allocation3 + $0x1], 0 }
   0x2   :  { %11 = vsyncpa [#allocation4], 0 }
   0x3   :  { %13 = vsyncpa [#allocation4 + $0x1], 0  ;;  %s569_s12 = smov 0   ;;  %s571_s13 = smov 0  }
   0x4   :  { %s573_s14 = smov 0   ;;  %s575_s15 = smov 0  }
   0x5 LB: > { %s590_s16 = sadd.s32 4294967295, %s542_s15   ;;  %s370_s17 = sadd.s32 4294967294, %s542_s15   ;;  %s542_s15 = sphi %s575_s15, %s760_s15   ;;  %s538_s14 = sphi %s573_s14, %s759_s14   ;;  %s534_s13 = sphi %s571_s13, %s758_s13   ;;  %s530_s12 = sphi %s569_s12, %s757_s12  }
   0x6   : > { %s594_s18 = sadd.s32 1, %s542_s15   ;;  %s26_s19 = sadd.s32 1, %s538_s14 }
   0x7   : > { %s23_s20 = ssub.s32 %s542_s15, %s594_s18  ;;  %p33_p0 = scmp.ne.s32.totalorder %s538_s14, %s534_s13 }
   0x8   : > { %p24_p1 = scmp.eq.s32.totalorder %s23_s20, 0  ;;  %p34_p2 = scmp.eq.s32.totalorder %s542_s15, 0 }
   0x9   : > { %p39_p3 = scmp.ne.s32.totalorder %s534_s13, %s530_s12  ;;  %p40_p4 = scmp.eq.s32.totalorder %s590_s16, 0 }
   0xa   : > { %s606_s21 = scalar_select %p24_p1, %s538_s14, %s26_s19  }
   0xb   : > { %p608_p5 = por %p34_p2, %p33_p0  ;;  %p612_p6 = por %p40_p4, %p39_p3 }
   0xc   : > { %p105_p7 = scmp.eq.s32.totalorder %s590_s16, 1  ;;  %p111_p8 = scmp.eq.s32.totalorder %s370_s17, 1 }
   0xd   : > { %p404_p10 = scmp.lt.s32.totalorder %s542_s15, 2  ;;  %s137_s26 = sand.u32 1, %s538_s14  }
   0xe   : > { %p619_p11 = por %p105_p7, %p33_p0  ;;  %p623_p12 = por %p111_p8, %p39_p3 }
   0xf   : > { %s374_s27 = sshll.u32 %s542_s15, 6  ;;  %s373_s28 = sshll.u32 %s137_s26, 2 }
  0x10   : > { %s749_s24 = scalar_select %p619_p11, 1, 0 }
  0x11   : > { %s750_s25 = scalar_select %p623_p12, 1, 0 }
  0x12   : > { %s632_s4 = scalar_lea.hbm %s742_s0, %s374_s27  ;;  %s141_s5 = scalar_lea.vmem [#allocation2], %s373_s28 }
  0x13   : > { %s148_s6 = sshll.u32 %s141_s5, 4  ;;  %p636_p13 = pnand %p404_p10, %p608_p5  ;;  %s640_s6 = int_to_ptr.vmem [resolvable:$true] %s148_s6 }
  0x14   : > { %s138_s8 = scalar_lea.sflag [#allocation3], %s137_s26  ;;  %s446_s9 = scalar_lea.hbm %s632_s4, 64 }
  0x15   : > { %p447_p2 = scmp.ne.s32.totalorder %s632_s4, %s446_s9  ;;  %p448_p3 = pneg %p636_p13 }
  0x16   : > { %s451_s17 = scalar_lea.hbm %s742_s0, 128  ;;  %p452_p5 = scmp.lt.u32.totalorder %s632_s4, %s742_s0 }
  0x17   : > { %p449_p4 = pnand %p448_p3, %p447_p2  ;;  %p453_p8 = scmp.lt.u32.totalorder %s451_s17, %s446_s9 }
  0x18   : > { %p455_p9 = scmp.lt.u32.totalorder %s446_s9, %s632_s4 }
  0x19   : > { %p450_p7 = pneg %p449_p4  ;;  %p454_p10 = por %p453_p8, %p452_p5 }
  0x1b   : > { %p456_p0 = por %p455_p9, %p454_p10 }
  0x1d   : > { %p457_p1 = pnand %p456_p0, %p450_p7 }
  0x1f   : > { %460 = shalt.err (!%p457_p1)
}
  0x20   : > { %s461_s22 = scalar_lea.vmem %s640_s6, 64  ;;  %s544_s26 = smov [#allocation2]  }
  0x21   : > { %p462_p2 = scmp.ne.s32.totalorder %s640_s6, %s461_s22  ;;  %s466_s27 = sshll.u32 %s544_s26, 4  ;;  %s467_s27 = int_to_ptr.vmem [resolvable:$false] %s466_s27 }
  0x22   : > { %s468_s28 = scalar_lea.vmem %s467_s27, 128  ;;  %p469_p11 = scmp.lt.s32.totalorder %s640_s6, %s467_s27 }
  0x23   : > { %p464_p4 = pnand %p462_p2, %p448_p3  ;;  %p470_p5 = scmp.lt.s32.totalorder %s468_s28, %s461_s22 }
  0x25   : > { %p465_p12 = pneg %p464_p4  ;;  %p471_p8 = por %p470_p5, %p469_p11 }
  0x27   : > { %p472_p9 = pnand %p471_p8, %p465_p12 }
  0x29   : > { %475 = shalt.err (!%p472_p9)
}
  0x2a   : > { %399 = dma.hbm_to_vmem [thread:$0]  (!%p636_p13), %s632_s4, 64, %s640_s6, %s138_s8  }
  0x2b   : > { %p752_p0 = scmp.lt.s32.totalorder %s542_s15, 3  ;;  %p753_p1 = scmp.ge.s32.totalorder %s542_s15, 1 }
  0x2d   : > { %p154_p3 = pnand %p753_p1, %p752_p0 }
  0x2e   : > { %s674_s29 = sand.u32 (!%p154_p3), 1, %s534_s13  }
  0x2f   : > { %157 = sbr.rel (%p154_p3) target bundleno = 588 (0x24c), region = 32  ;;  %s376_s30 = sshll.u32 (!%p154_p3), %s674_s29, 2 }
  0x30   : > { %s160_s5 = scalar_lea.sflag (!%p154_p3), [#allocation3], %s674_s29  ;;  %s163_s7 = scalar_lea.vmem (!%p154_p3), [#allocation2], %s376_s30 }
  0x36   : > { %521 = dma.done.wait (%p612_p6), %s160_s5, 64  }
  0x37   : > { %523 = vsyncadd (%p612_p6), %s160_s5, 4294967232  ;;  %vm187_vm0 = vcmask 125952   ;;  %v186_v0 = vld [vmem:[%s163_s7] sm:$0xf]  ;;  %v545_v2 = vmov 0.0   ;;  %vm546_vm1 = vmmov 0  }
  0x38   : > { %v188_v1 = vsel %vm187_vm0, %v186_v0, 0.0  ;;  %387 = vmatprep.subr.mxu0 %v545_v2  ;;  %389 = vmatprep.mubr.msk.f32.mxu0 %vm546_vm1, %v545_v2  ;;  %vm198_vm2 = vcmask 1043456   ;;  %v192_v5 = vld [vmem:[%s743_s1] sm:$0xf]  ;;  %vm194_vm3 = vcmask 31744   ;;  %v547_v6 = vmov 0  }
  0x39   : > { %189 = vadd.xlane.f32.xlu0 %v188_v1  ;;  %v193_v7 = vld [vmem:[%s744_s2] sm:$0xf]  ;;  %s382_s9 = sshll.u32 %s590_s16, 6  ;;  %s185_s10 = scalar_lea.vmem [#allocation5], %s376_s30 }
  0x3a   : > { %441 = vset.pattern.permute.xlu0 %v547_v6  ;;  %s300_s11 = sshll.u32 %s185_s10, 4  ;;  %s697_s20 = scalar_lea.hbm %s745_s3, %s382_s9  ;;  %s699_s11 = int_to_ptr.vmem [resolvable:$true] %s300_s11 }
  0x3b   : > { %s287_s22 = scalar_lea.sflag [#allocation4], %s674_s29  ;;  %s476_s26 = scalar_lea.vmem %s699_s11, 64 }
  0x3c   : > { %p477_p6 = scmp.ne.s32.totalorder %s699_s11, %s476_s26  ;;  %p754_p11 = scmp.ne.s32.totalorder %s749_s24, 0 }
  0x3d   : > { %s548_s16 = smov [#allocation5]  }
  0x3e   : > { %p478_p12 = pnand %p477_p6, %p754_p11  ;;  %s480_s27 = sshll.u32 %s548_s16, 4  ;;  %s481_s27 = int_to_ptr.vmem [resolvable:$false] %s480_s27 }
  0x3f   : > { %s482_s28 = scalar_lea.vmem %s481_s27, 128  ;;  %p483_p7 = scmp.lt.s32.totalorder %s699_s11, %s481_s27 }
  0x40   : > { %p479_p13 = pneg %p478_p12  ;;  %p484_p10 = scmp.lt.s32.totalorder %s482_s28, %s476_s26 }
  0x42   : > { %p485_p2 = por %p484_p10, %p483_p7 }
  0x44   : > { %p486_p4 = pnand %p485_p2, %p479_p13 }
  0xc6   : > { %v190_v3 = vpop.xlane.xlu0 %189 }
  0xc7   : > { %v191_v4 = vmul.f32 0.0625, %v190_v3 }
  0xc9   : > { %388 = vmatpush3.msk.msra.mxu0 %vm198_vm2, %v191_v4 }
  0xca   : > { %390 = vmatmul.mubr.msk.f32.vlgmr.msra.gmra.mrb[0].mxu0 %vm194_vm3, %v192_v5 }
 0x19d   : > { %v268_v8 = vpop.f32.mrb[0].mxu0 }
 0x19e   : > { %v269_v9 = vadd.f32 %v268_v8, %v193_v7  ;;  %v391_v10 = vpop.f32.mrb[1].mxu0 }
 0x1a0   : > { %v380_v11 = vmul.f32 -1.442695, %v269_v9 }
 0x1a2   : > { %442 = vpow2.f32 %v380_v11 }
 0x1ac   : > { %v443_v12 = vpop.eup %442 }
 0x1ad   : > { %v275_v13 = vadd.f32 1.0, %v443_v12 }
 0x1af   : > { %444 = vrcp.f32 %v275_v13 }
 0x1b9   : > { %v445_v14 = vpop.eup %444 }
 0x1ba   : > { %280 = vperm.xlu0 %441, %v445_v14  }
 0x239   : > { %v281_v15 = vpop.permute.xlu0 %280 }
 0x23a   : > { %v283_v16 = vmul.f32 %v281_v15, %v186_v0 }
 0x23c   : > { %v284_v17 = vadd.f32 %v283_v16, %v281_v15 }
 0x23e   : > { %285 = vst.msk [vmem:[%s185_s10] sm:$0xf] %vm187_vm0, %v284_v17 }
 0x23f   : > { %489 = shalt.err (!%p486_p4)
}
 0x240   : > { %s490_s29 = scalar_lea.hbm %s697_s20, 64  ;;  %s494_s7 = scalar_lea.hbm %s745_s3, 128 }
 0x241   : > { %p491_p5 = scmp.ne.s32.totalorder %s697_s20, %s490_s29  ;;  %p495_p0 = scmp.lt.u32.totalorder %s697_s20, %s745_s3 }
 0x242   : > { %p496_p1 = scmp.lt.u32.totalorder %s494_s7, %s490_s29  ;;  %p498_p6 = scmp.lt.u32.totalorder %s490_s29, %s697_s20 }
 0x243   : > { %p492_p8 = pnand %p491_p5, %p754_p11 }
 0x244   : > { %p497_p3 = por %p496_p1, %p495_p0 }
 0x245   : > { %p493_p9 = pneg %p492_p8 }
 0x246   : > { %p499_p12 = por %p498_p6, %p497_p3 }
 0x248   : > { %p500_p13 = pnand %p499_p12, %p493_p9 }
 0x24a   : > { %503 = shalt.err (!%p500_p13)
}
 0x24b   : > { %394 = dma.vmem_to_hbm [thread:$0]  (%p754_p11), %s699_s11, 64, %s697_s20, %s287_s22  }
 0x24c PF: > { %s312_s23 = sand.u32 1, %s530_s12   ;;  %p755_p7 = scmp.ne.s32.totalorder %s750_s25, 0 }
 0x24d   : > { %p756_p10 = scmp.ge.s32.totalorder %s542_s15, 2  ;;  %s313_s8 = scalar_lea.sflag [#allocation4], %s312_s23 }
 0x24f   : > { %p401_p2 = pnand %p756_p10, %p755_p7 }
 0x251   : > { %525 = dma.done.wait (!%p401_p2), %s313_s8, 64  }
 0x252   : > { %527 = vsyncadd (!%p401_p2), %s313_s8, 4294967232  ;;  %p16_p4 = scmp.ge.s32.totalorder %s594_s18, 4   ;;  %s757_s12 = smov %s534_s13 }
 0x253   : > { %s758_s13 = smov %s538_s14  ;;  %s759_s14 = smov %s606_s21 }
 0x254   : > { %s760_s15 = smov %s594_s18  ;;  %18 = sbr.rel (!%p16_p4) target bundleno = 5 (0x5), region = 77 }
 0x25b   :  { %318 = vsyncpa [#allocation3], 1 }
 0x25c   :  { %320 = vsyncpa [#allocation3 + $0x1], 1 }
 0x25d   :  { %321 = vsyncpa [#allocation4], 1 }
 0x25e   :  { %323 = vsyncpa [#allocation4 + $0x1], 1 }

</bundles_post_ra>
